<compile_context>
chip_gen: v5e
topology: v5e:2x2
jax: 0.10.0
libtpu: 0.0.40
codegen_flags: <defaults>
</compile_context>

<pallas_src>
import functools

import jax
import jax.numpy as jnp
from jax.experimental import pallas as pl
from jax.experimental.pallas import tpu as pltpu


# --------------------------------------------------------------------------- #
# Kernel
# --------------------------------------------------------------------------- #
def _spectral_mul_kernel(a_ref, w_ref, o_ref):
    """Complex mode-wise channel contraction for one (B-tile, Cout-tile, M-tile).

    Block shapes (mode axis lane-dense on the last dim):
      a_ref: (Cin, 2, tb,  Mt)   activation planes [ar, ai]
      w_ref: (Cin, 3, tco, Mt)   weight planes     [wr, wi-wr, wr+wi]
      o_ref: (2,  tb, tco, Mt)   output planes     [re, im]
    Computes o[b, o, m] = sum_i a[i, b, m] * w[i, o, m] (complex), using the
    3-multiply Karatsuba form with the weight pre-sums computed in the wrapper:
      k1 = wr*(ar+ai); re = k1 - ai*(wr+wi); im = k1 + ar*(wi-wr)
    """
    cin, _, tb, mt = a_ref.shape
    tco = w_ref.shape[2]

    def body(i, carry):
        acc_re, acc_im = carry
        ab = a_ref[i]                      # (2, tb, Mt)   dynamic leading index
        wb = w_ref[i]                      # (3, tco, Mt)
        ar = ab[0][:, None, :]             # (tb, 1, Mt)
        ai = ab[1][:, None, :]
        wr = wb[0][None, :, :]             # (1, tco, Mt)
        wd = wb[1][None, :, :]             # wi - wr
        ws = wb[2][None, :, :]             # wr + wi
        k1 = wr * (ar + ai)
        acc_re = acc_re + (k1 - ai * ws)
        acc_im = acc_im + (k1 + ar * wd)
        return acc_re, acc_im

    zero = jnp.zeros((tb, tco, mt), jnp.float32)
    unroll = cin if cin <= 8 else 4
    acc_re, acc_im = jax.lax.fori_loop(0, cin, body, (zero, zero), unroll=unroll)
    o_ref[0] = acc_re
    o_ref[1] = acc_im


# --------------------------------------------------------------------------- #
# Tiling / VMEM sizing
# --------------------------------------------------------------------------- #
def _pick_tile(n, candidates):
    for t in candidates:
        if n % t == 0:
            return t
    return n  # full axis is always a legal block dim


def _pick_tiles(b, cout, mp):
    """Pick (tb, tco, Mt) so the live accumulator pair stays in the vreg file."""
    mt = _pick_tile(mp, (512, 256, 128))         # mp is a multiple of 128
    tb = _pick_tile(b, (16, 8))                  # sublane-aligned or full axis
    tco = _pick_tile(cout, (32, 16, 8))
    # Keep 2 * tb*tco*Mt * 4B <= ~128 KiB (<= 32 vregs) so the fori_loop carries
    # never spill to VMEM between Cin iterations.
    while tb * tco * mt > 16384:
        if mt > 128:
            mt //= 2
        elif tco % 16 == 0:
            tco //= 2
        elif tb % 16 == 0:
            tb //= 2
        else:
            break  # odd B/Cout: accept sublane padding (document for prod shapes)
    return tb, tco, mt


def _vmem_cap_bytes():
    try:
        return int(0.75 * pltpu.get_tpu_info().vmem_capacity_bytes)
    except Exception:
        return 48 << 20  # safe on v7x (64 MiB physical); conservative elsewhere


def _vmem_limit_bytes(cin, tb, tco, mt):
    elem = 4
    a_blk = 2 * cin * tb * mt * elem
    w_blk = 3 * cin * tco * mt * elem
    o_blk = 2 * tb * tco * mt * elem
    acc_tmp = 5 * tb * tco * mt * elem           # acc_re/acc_im + k temporaries
    need = 2 * (a_blk + w_blk + o_blk) + acc_tmp  # double-buffered blocks
    return int(min(max(2 * need, 16 << 20), _vmem_cap_bytes()))


# --------------------------------------------------------------------------- #
# pallas_call wrapper for the spectral channel contraction
# --------------------------------------------------------------------------- #
def _compl_mul(a, w):
    """a: (Cin, 2, B, Mp), w: (Cin, 3, Cout, Mp) -> o: (2, B, Cout, Mp) f32."""
    cin, _, b, mp = a.shape
    cout = w.shape[2]
    tb, tco, mt = _pick_tiles(b, cout, mp)
    n_b, n_co, n_m = b // tb, cout // tco, mp // mt

    # Hold the larger operand resident across the innermost grid axis (its block
    # index stays constant there, so Pallas skips the re-fetch); stream the
    # smaller one.  All grid axes are independent -> all "parallel".
    weights_resident = cout >= b
    if weights_resident:
        grid = (n_m, n_co, n_b)                  # inner axis: batch tiles
        a_idx = lambda m, j, i: (0, 0, i, m)
        w_idx = lambda m, j, i: (0, 0, j, m)
        o_idx = lambda m, j, i: (0, i, j, m)
    else:
        grid = (n_m, n_b, n_co)                  # inner axis: cout tiles
        a_idx = lambda m, i, j: (0, 0, i, m)
        w_idx = lambda m, i, j: (0, 0, j, m)
        o_idx = lambda m, i, j: (0, i, j, m)

    a_spec = pl.BlockSpec((cin, 2, tb, mt), a_idx)
    w_spec = pl.BlockSpec((cin, 3, tco, mt), w_idx)
    o_spec = pl.BlockSpec((2, tb, tco, mt), o_idx)

    # TODO(synk): if Cin*(tb+tco)*Mt grows toward the VMEM limit, split Cin into
    # a trailing "arbitrary" grid reduction axis with a pl.when-initialized
    # accumulator scratch instead of holding all of Cin in one block.
    return pl.pallas_call(
        _spectral_mul_kernel,
        grid=grid,
        in_specs=[a_spec, w_spec],
        out_specs=o_spec,
        out_shape=jax.ShapeDtypeStruct((2, b, cout, mp), jnp.float32),
        compiler_params=pltpu.CompilerParams(
            dimension_semantics=("parallel", "parallel", "parallel"),
            vmem_limit_bytes=_vmem_limit_bytes(cin, tb, tco, mt),
        ),
    )(a, w)


# --------------------------------------------------------------------------- #
# Full forward pass (matches PyTorch SpectralConv2d.forward, NCHW input)
# --------------------------------------------------------------------------- #
def spectral_conv2d(x, weights1, weights2, modes1, modes2):
    B, Cin, H, W = x.shape
    Cout = weights1.shape[1]
    # Corner slices must not overlap / exceed the rFFT spectrum.
    assert modes1 <= H // 2, (modes1, H)
    assert modes2 <= W // 2 + 1, (modes2, W)

    m12 = modes1 * modes2
    M = 2 * m12                              # both corners folded into the lane axis
    Mp = -(-M // 128) * 128                  # pad mode axis to a multiple of 128

    # TODO(synk): rfft2 / irfft2 have no Pallas TPU primitive; computed in plain JAX.
    x_ft = jnp.fft.rfft2(x)                                  # (B, Cin, H, W//2+1) c64
    top = x_ft[:, :, :modes1, :modes2]                       # low positive frequencies
    bot = x_ft[:, :, H - modes1:, :modes2]                   # low negative frequencies

    # Activations: fold corners, split re/im planes, lane-dense mode axis.
    act = jnp.concatenate(
        [top.reshape(B, Cin, m12), bot.reshape(B, Cin, m12)], axis=-1)   # (B, Cin, M)
    act = jnp.transpose(act, (1, 0, 2))                                  # (Cin, B, M)
    a = jnp.stack([act.real, act.imag], axis=1).astype(jnp.float32)      # (Cin, 2, B, M)
    a = jnp.pad(a, ((0, 0), (0, 0), (0, 0), (0, Mp - M)))

    # Weights: fold corners and precompute the Karatsuba pre-sums once.
    wc = jnp.concatenate(
        [weights1.reshape(Cin, Cout, m12), weights2.reshape(Cin, Cout, m12)],
        axis=-1)                                                         # (Cin, Cout, M)
    wr = wc.real.astype(jnp.float32)
    wi = wc.imag.astype(jnp.float32)
    w = jnp.stack([wr, wi - wr, wr + wi], axis=1)                        # (Cin, 3, Cout, M)
    w = jnp.pad(w, ((0, 0), (0, 0), (0, 0), (0, Mp - M)))

    o = _compl_mul(a, w)                                 # (2, B, Cout, Mp) f32
    o = o[..., :M]
    o_c = (o[0] + 1j * o[1]).astype(jnp.complex64)       # (B, Cout, M)
    o_top = o_c[..., :m12].reshape(B, Cout, modes1, modes2)
    o_bot = o_c[..., m12:].reshape(B, Cout, modes1, modes2)

    out_ft = jnp.zeros((B, Cout, H, W // 2 + 1), jnp.complex64)
    out_ft = out_ft.at[:, :, :modes1, :modes2].set(o_top)
    out_ft = out_ft.at[:, :, H - modes1:, :modes2].set(o_bot)
    return jnp.fft.irfft2(out_ft, s=(H, W))              # (B, Cout, H, W) f32


def _reference(x, weights1, weights2, modes1, modes2):
    """Pure-JAX reference (mirror of the PyTorch forward) for validation."""
    B, Cin, H, W = x.shape
    Cout = weights1.shape[1]
    x_ft = jnp.fft.rfft2(x)
    out_ft = jnp.zeros((B, Cout, H, W // 2 + 1), jnp.complex64)
    out_ft = out_ft.at[:, :, :modes1, :modes2].set(
        jnp.einsum("bixy,ioxy->boxy", x_ft[:, :, :modes1, :modes2], weights1))
    out_ft = out_ft.at[:, :, H - modes1:, :modes2].set(
        jnp.einsum("bixy,ioxy->boxy", x_ft[:, :, H - modes1:, :modes2], weights2))
    return jnp.fft.irfft2(out_ft, s=(H, W))


if __name__ == "__main__":
    # Small, deterministic configuration consistent with the module.
    B, Cin, Cout, H, W = 2, 4, 4, 16, 16
    modes1, modes2 = 4, 4

    key = jax.random.PRNGKey(0)
    kx, kw1r, kw1i, kw2r, kw2i = jax.random.split(key, 5)

    scale = 1.0 / (Cin * Cout)
    # torch.rand(..., dtype=cfloat) -> uniform [0,1) real and imaginary parts.
    weights1 = scale * (
        jax.random.uniform(kw1r, (Cin, Cout, modes1, modes2), jnp.float32)
        + 1j * jax.random.uniform(kw1i, (Cin, Cout, modes1, modes2), jnp.float32)
    ).astype(jnp.complex64)
    weights2 = scale * (
        jax.random.uniform(kw2r, (Cin, Cout, modes1, modes2), jnp.float32)
        + 1j * jax.random.uniform(kw2i, (Cin, Cout, modes1, modes2), jnp.float32)
    ).astype(jnp.complex64)

    x = jax.random.normal(kx, (B, Cin, H, W), jnp.float32)

    fwd = jax.jit(functools.partial(spectral_conv2d, modes1=modes1, modes2=modes2))
    out = jax.block_until_ready(fwd(x, weights1, weights2))

    ref = jax.block_until_ready(_reference(x, weights1, weights2, modes1, modes2))

    assert out.shape == (B, Cout, H, W), out.shape
    assert out.dtype == jnp.float32, out.dtype
    assert jnp.allclose(out, ref, atol=1e-4, rtol=1e-4), float(jnp.max(jnp.abs(out - ref)))

    print("KERNEL_OK")
</pallas_src>

<mosaic_0001>
module attributes {stable_mosaic.version = 11 : i64} {
  func.func @_spectral_mul_kernel(%arg0: i32, %arg1: i32, %arg2: i32, %arg3: memref<4x2x2x128xf32, #tpu.memory_space<vmem>>, %arg4: memref<4x3x4x128xf32, #tpu.memory_space<vmem>>, %arg5: memref<2x2x4x128xf32, #tpu.memory_space<vmem>>) attributes {dimension_semantics = [#tpu.dimension_semantics<parallel>, #tpu.dimension_semantics<parallel>, #tpu.dimension_semantics<parallel>], iteration_bounds = array<i64: 1, 1, 1>, scalar_prefetch = 0 : i64, scratch_operands = 0 : i64, tpu.core_type = #tpu.core_type<tc>, window_params = [{transform_indices = @transform_0, window_bounds = array<i64: 4, 2, 2, 128>}, {transform_indices = @transform_1, window_bounds = array<i64: 4, 3, 4, 128>}, {transform_indices = @transform_2, window_bounds = array<i64: 2, 2, 4, 128>}]} {
    %cst = arith.constant 0.000000e+00 : f32
    %0 = vector.broadcast %cst : f32 to vector<2x4x128xf32>
    %c0_i32 = arith.constant 0 : i32
    %1 = arith.index_cast %c0_i32 : i32 to index
    %c0 = arith.constant 0 : index
    %c0_0 = arith.constant 0 : index
    %c0_1 = arith.constant 0 : index
    %2 = vector.load %arg3[%1, %c0, %c0_0, %c0_1] : memref<4x2x2x128xf32, #tpu.memory_space<vmem>>, vector<1x2x2x128xf32>
    %3 = vector.shape_cast %2 : vector<1x2x2x128xf32> to vector<2x2x128xf32>
    %4 = arith.index_cast %c0_i32 : i32 to index
    %c0_2 = arith.constant 0 : index
    %c0_3 = arith.constant 0 : index
    %c0_4 = arith.constant 0 : index
    %5 = vector.load %arg4[%4, %c0_2, %c0_3, %c0_4] : memref<4x3x4x128xf32, #tpu.memory_space<vmem>>, vector<1x3x4x128xf32>
    %6 = vector.shape_cast %5 : vector<1x3x4x128xf32> to vector<3x4x128xf32>
    %7 = vector.extract_strided_slice %3 {offsets = [0, 0, 0], sizes = [1, 2, 128], strides = [1, 1, 1]} : vector<2x2x128xf32> to vector<1x2x128xf32>
    %8 = vector.shape_cast %7 : vector<1x2x128xf32> to vector<2x128xf32>
    %9 = vector.shape_cast %8 : vector<2x128xf32> to vector<2x1x128xf32>
    %10 = vector.extract_strided_slice %3 {offsets = [1, 0, 0], sizes = [1, 2, 128], strides = [1, 1, 1]} : vector<2x2x128xf32> to vector<1x2x128xf32>
    %11 = vector.shape_cast %10 : vector<1x2x128xf32> to vector<2x128xf32>
    %12 = vector.shape_cast %11 : vector<2x128xf32> to vector<2x1x128xf32>
    %13 = vector.extract_strided_slice %6 {offsets = [0, 0, 0], sizes = [1, 4, 128], strides = [1, 1, 1]} : vector<3x4x128xf32> to vector<1x4x128xf32>
    %14 = vector.shape_cast %13 : vector<1x4x128xf32> to vector<4x128xf32>
    %15 = vector.shape_cast %14 : vector<4x128xf32> to vector<1x4x128xf32>
    %16 = vector.extract_strided_slice %6 {offsets = [1, 0, 0], sizes = [1, 4, 128], strides = [1, 1, 1]} : vector<3x4x128xf32> to vector<1x4x128xf32>
    %17 = vector.shape_cast %16 : vector<1x4x128xf32> to vector<4x128xf32>
    %18 = vector.shape_cast %17 : vector<4x128xf32> to vector<1x4x128xf32>
    %19 = vector.extract_strided_slice %6 {offsets = [2, 0, 0], sizes = [1, 4, 128], strides = [1, 1, 1]} : vector<3x4x128xf32> to vector<1x4x128xf32>
    %20 = vector.shape_cast %19 : vector<1x4x128xf32> to vector<4x128xf32>
    %21 = vector.shape_cast %20 : vector<4x128xf32> to vector<1x4x128xf32>
    %22 = arith.addf %9, %12 : vector<2x1x128xf32>
    %23 = vector.broadcast %15 : vector<1x4x128xf32> to vector<2x4x128xf32>
    %24 = vector.broadcast %22 : vector<2x1x128xf32> to vector<2x4x128xf32>
    %25 = arith.mulf %23, %24 : vector<2x4x128xf32>
    %26 = vector.broadcast %12 : vector<2x1x128xf32> to vector<2x4x128xf32>
    %27 = vector.broadcast %21 : vector<1x4x128xf32> to vector<2x4x128xf32>
    %28 = arith.mulf %26, %27 : vector<2x4x128xf32>
    %29 = arith.subf %25, %28 : vector<2x4x128xf32>
    %30 = arith.addf %0, %29 : vector<2x4x128xf32>
    %31 = vector.broadcast %9 : vector<2x1x128xf32> to vector<2x4x128xf32>
    %32 = vector.broadcast %18 : vector<1x4x128xf32> to vector<2x4x128xf32>
    %33 = arith.mulf %31, %32 : vector<2x4x128xf32>
    %34 = arith.addf %25, %33 : vector<2x4x128xf32>
    %35 = arith.addf %0, %34 : vector<2x4x128xf32>
    %c1_i32 = arith.constant 1 : i32
    %36 = arith.index_cast %c1_i32 : i32 to index
    %c0_5 = arith.constant 0 : index
    %c0_6 = arith.constant 0 : index
    %c0_7 = arith.constant 0 : index
    %37 = vector.load %arg3[%36, %c0_5, %c0_6, %c0_7] : memref<4x2x2x128xf32, #tpu.memory_space<vmem>>, vector<1x2x2x128xf32>
    %38 = vector.shape_cast %37 : vector<1x2x2x128xf32> to vector<2x2x128xf32>
    %39 = arith.index_cast %c1_i32 : i32 to index
    %c0_8 = arith.constant 0 : index
    %c0_9 = arith.constant 0 : index
    %c0_10 = arith.constant 0 : index
    %40 = vector.load %arg4[%39, %c0_8, %c0_9, %c0_10] : memref<4x3x4x128xf32, #tpu.memory_space<vmem>>, vector<1x3x4x128xf32>
    %41 = vector.shape_cast %40 : vector<1x3x4x128xf32> to vector<3x4x128xf32>
    %42 = vector.extract_strided_slice %38 {offsets = [0, 0, 0], sizes = [1, 2, 128], strides = [1, 1, 1]} : vector<2x2x128xf32> to vector<1x2x128xf32>
    %43 = vector.shape_cast %42 : vector<1x2x128xf32> to vector<2x128xf32>
    %44 = vector.shape_cast %43 : vector<2x128xf32> to vector<2x1x128xf32>
    %45 = vector.extract_strided_slice %38 {offsets = [1, 0, 0], sizes = [1, 2, 128], strides = [1, 1, 1]} : vector<2x2x128xf32> to vector<1x2x128xf32>
    %46 = vector.shape_cast %45 : vector<1x2x128xf32> to vector<2x128xf32>
    %47 = vector.shape_cast %46 : vector<2x128xf32> to vector<2x1x128xf32>
    %48 = vector.extract_strided_slice %41 {offsets = [0, 0, 0], sizes = [1, 4, 128], strides = [1, 1, 1]} : vector<3x4x128xf32> to vector<1x4x128xf32>
    %49 = vector.shape_cast %48 : vector<1x4x128xf32> to vector<4x128xf32>
    %50 = vector.shape_cast %49 : vector<4x128xf32> to vector<1x4x128xf32>
    %51 = vector.extract_strided_slice %41 {offsets = [1, 0, 0], sizes = [1, 4, 128], strides = [1, 1, 1]} : vector<3x4x128xf32> to vector<1x4x128xf32>
    %52 = vector.shape_cast %51 : vector<1x4x128xf32> to vector<4x128xf32>
    %53 = vector.shape_cast %52 : vector<4x128xf32> to vector<1x4x128xf32>
    %54 = vector.extract_strided_slice %41 {offsets = [2, 0, 0], sizes = [1, 4, 128], strides = [1, 1, 1]} : vector<3x4x128xf32> to vector<1x4x128xf32>
    %55 = vector.shape_cast %54 : vector<1x4x128xf32> to vector<4x128xf32>
    %56 = vector.shape_cast %55 : vector<4x128xf32> to vector<1x4x128xf32>
    %57 = arith.addf %44, %47 : vector<2x1x128xf32>
    %58 = vector.broadcast %50 : vector<1x4x128xf32> to vector<2x4x128xf32>
    %59 = vector.broadcast %57 : vector<2x1x128xf32> to vector<2x4x128xf32>
    %60 = arith.mulf %58, %59 : vector<2x4x128xf32>
    %61 = vector.broadcast %47 : vector<2x1x128xf32> to vector<2x4x128xf32>
    %62 = vector.broadcast %56 : vector<1x4x128xf32> to vector<2x4x128xf32>
    %63 = arith.mulf %61, %62 : vector<2x4x128xf32>
    %64 = arith.subf %60, %63 : vector<2x4x128xf32>
    %65 = arith.addf %30, %64 : vector<2x4x128xf32>
    %66 = vector.broadcast %44 : vector<2x1x128xf32> to vector<2x4x128xf32>
    %67 = vector.broadcast %53 : vector<1x4x128xf32> to vector<2x4x128xf32>
    %68 = arith.mulf %66, %67 : vector<2x4x128xf32>
    %69 = arith.addf %60, %68 : vector<2x4x128xf32>
    %70 = arith.addf %35, %69 : vector<2x4x128xf32>
    %c2_i32 = arith.constant 2 : i32
    %71 = arith.index_cast %c2_i32 : i32 to index
    %c0_11 = arith.constant 0 : index
    %c0_12 = arith.constant 0 : index
    %c0_13 = arith.constant 0 : index
    %72 = vector.load %arg3[%71, %c0_11, %c0_12, %c0_13] : memref<4x2x2x128xf32, #tpu.memory_space<vmem>>, vector<1x2x2x128xf32>
    %73 = vector.shape_cast %72 : vector<1x2x2x128xf32> to vector<2x2x128xf32>
    %74 = arith.index_cast %c2_i32 : i32 to index
    %c0_14 = arith.constant 0 : index
    %c0_15 = arith.constant 0 : index
    %c0_16 = arith.constant 0 : index
    %75 = vector.load %arg4[%74, %c0_14, %c0_15, %c0_16] : memref<4x3x4x128xf32, #tpu.memory_space<vmem>>, vector<1x3x4x128xf32>
    %76 = vector.shape_cast %75 : vector<1x3x4x128xf32> to vector<3x4x128xf32>
    %77 = vector.extract_strided_slice %73 {offsets = [0, 0, 0], sizes = [1, 2, 128], strides = [1, 1, 1]} : vector<2x2x128xf32> to vector<1x2x128xf32>
    %78 = vector.shape_cast %77 : vector<1x2x128xf32> to vector<2x128xf32>
    %79 = vector.shape_cast %78 : vector<2x128xf32> to vector<2x1x128xf32>
    %80 = vector.extract_strided_slice %73 {offsets = [1, 0, 0], sizes = [1, 2, 128], strides = [1, 1, 1]} : vector<2x2x128xf32> to vector<1x2x128xf32>
    %81 = vector.shape_cast %80 : vector<1x2x128xf32> to vector<2x128xf32>
    %82 = vector.shape_cast %81 : vector<2x128xf32> to vector<2x1x128xf32>
    %83 = vector.extract_strided_slice %76 {offsets = [0, 0, 0], sizes = [1, 4, 128], strides = [1, 1, 1]} : vector<3x4x128xf32> to vector<1x4x128xf32>
    %84 = vector.shape_cast %83 : vector<1x4x128xf32> to vector<4x128xf32>
    %85 = vector.shape_cast %84 : vector<4x128xf32> to vector<1x4x128xf32>
    %86 = vector.extract_strided_slice %76 {offsets = [1, 0, 0], sizes = [1, 4, 128], strides = [1, 1, 1]} : vector<3x4x128xf32> to vector<1x4x128xf32>
    %87 = vector.shape_cast %86 : vector<1x4x128xf32> to vector<4x128xf32>
    %88 = vector.shape_cast %87 : vector<4x128xf32> to vector<1x4x128xf32>
    %89 = vector.extract_strided_slice %76 {offsets = [2, 0, 0], sizes = [1, 4, 128], strides = [1, 1, 1]} : vector<3x4x128xf32> to vector<1x4x128xf32>
    %90 = vector.shape_cast %89 : vector<1x4x128xf32> to vector<4x128xf32>
    %91 = vector.shape_cast %90 : vector<4x128xf32> to vector<1x4x128xf32>
    %92 = arith.addf %79, %82 : vector<2x1x128xf32>
    %93 = vector.broadcast %85 : vector<1x4x128xf32> to vector<2x4x128xf32>
    %94 = vector.broadcast %92 : vector<2x1x128xf32> to vector<2x4x128xf32>
    %95 = arith.mulf %93, %94 : vector<2x4x128xf32>
    %96 = vector.broadcast %82 : vector<2x1x128xf32> to vector<2x4x128xf32>
    %97 = vector.broadcast %91 : vector<1x4x128xf32> to vector<2x4x128xf32>
    %98 = arith.mulf %96, %97 : vector<2x4x128xf32>
    %99 = arith.subf %95, %98 : vector<2x4x128xf32>
    %100 = arith.addf %65, %99 : vector<2x4x128xf32>
    %101 = vector.broadcast %79 : vector<2x1x128xf32> to vector<2x4x128xf32>
    %102 = vector.broadcast %88 : vector<1x4x128xf32> to vector<2x4x128xf32>
    %103 = arith.mulf %101, %102 : vector<2x4x128xf32>
    %104 = arith.addf %95, %103 : vector<2x4x128xf32>
    %105 = arith.addf %70, %104 : vector<2x4x128xf32>
    %c3_i32 = arith.constant 3 : i32
    %106 = arith.index_cast %c3_i32 : i32 to index
    %c0_17 = arith.constant 0 : index
    %c0_18 = arith.constant 0 : index
    %c0_19 = arith.constant 0 : index
    %107 = vector.load %arg3[%106, %c0_17, %c0_18, %c0_19] : memref<4x2x2x128xf32, #tpu.memory_space<vmem>>, vector<1x2x2x128xf32>
    %108 = vector.shape_cast %107 : vector<1x2x2x128xf32> to vector<2x2x128xf32>
    %109 = arith.index_cast %c3_i32 : i32 to index
    %c0_20 = arith.constant 0 : index
    %c0_21 = arith.constant 0 : index
    %c0_22 = arith.constant 0 : index
    %110 = vector.load %arg4[%109, %c0_20, %c0_21, %c0_22] : memref<4x3x4x128xf32, #tpu.memory_space<vmem>>, vector<1x3x4x128xf32>
    %111 = vector.shape_cast %110 : vector<1x3x4x128xf32> to vector<3x4x128xf32>
    %112 = vector.extract_strided_slice %108 {offsets = [0, 0, 0], sizes = [1, 2, 128], strides = [1, 1, 1]} : vector<2x2x128xf32> to vector<1x2x128xf32>
    %113 = vector.shape_cast %112 : vector<1x2x128xf32> to vector<2x128xf32>
    %114 = vector.shape_cast %113 : vector<2x128xf32> to vector<2x1x128xf32>
    %115 = vector.extract_strided_slice %108 {offsets = [1, 0, 0], sizes = [1, 2, 128], strides = [1, 1, 1]} : vector<2x2x128xf32> to vector<1x2x128xf32>
    %116 = vector.shape_cast %115 : vector<1x2x128xf32> to vector<2x128xf32>
    %117 = vector.shape_cast %116 : vector<2x128xf32> to vector<2x1x128xf32>
    %118 = vector.extract_strided_slice %111 {offsets = [0, 0, 0], sizes = [1, 4, 128], strides = [1, 1, 1]} : vector<3x4x128xf32> to vector<1x4x128xf32>
    %119 = vector.shape_cast %118 : vector<1x4x128xf32> to vector<4x128xf32>
    %120 = vector.shape_cast %119 : vector<4x128xf32> to vector<1x4x128xf32>
    %121 = vector.extract_strided_slice %111 {offsets = [1, 0, 0], sizes = [1, 4, 128], strides = [1, 1, 1]} : vector<3x4x128xf32> to vector<1x4x128xf32>
    %122 = vector.shape_cast %121 : vector<1x4x128xf32> to vector<4x128xf32>
    %123 = vector.shape_cast %122 : vector<4x128xf32> to vector<1x4x128xf32>
    %124 = vector.extract_strided_slice %111 {offsets = [2, 0, 0], sizes = [1, 4, 128], strides = [1, 1, 1]} : vector<3x4x128xf32> to vector<1x4x128xf32>
    %125 = vector.shape_cast %124 : vector<1x4x128xf32> to vector<4x128xf32>
    %126 = vector.shape_cast %125 : vector<4x128xf32> to vector<1x4x128xf32>
    %127 = arith.addf %114, %117 : vector<2x1x128xf32>
    %128 = vector.broadcast %120 : vector<1x4x128xf32> to vector<2x4x128xf32>
    %129 = vector.broadcast %127 : vector<2x1x128xf32> to vector<2x4x128xf32>
    %130 = arith.mulf %128, %129 : vector<2x4x128xf32>
    %131 = vector.broadcast %117 : vector<2x1x128xf32> to vector<2x4x128xf32>
    %132 = vector.broadcast %126 : vector<1x4x128xf32> to vector<2x4x128xf32>
    %133 = arith.mulf %131, %132 : vector<2x4x128xf32>
    %134 = arith.subf %130, %133 : vector<2x4x128xf32>
    %135 = arith.addf %100, %134 : vector<2x4x128xf32>
    %136 = vector.broadcast %114 : vector<2x1x128xf32> to vector<2x4x128xf32>
    %137 = vector.broadcast %123 : vector<1x4x128xf32> to vector<2x4x128xf32>
    %138 = arith.mulf %136, %137 : vector<2x4x128xf32>
    %139 = arith.addf %130, %138 : vector<2x4x128xf32>
    %140 = arith.addf %105, %139 : vector<2x4x128xf32>
    %c4_i32 = arith.constant 4 : i32
    %c0_23 = arith.constant 0 : index
    %c0_24 = arith.constant 0 : index
    %c0_25 = arith.constant 0 : index
    %c0_26 = arith.constant 0 : index
    %141 = vector.load %arg5[%c0_23, %c0_24, %c0_25, %c0_26] : memref<2x2x4x128xf32, #tpu.memory_space<vmem>>, vector<1x2x4x128xf32>
    %142 = vector.shape_cast %141 : vector<1x2x4x128xf32> to vector<2x4x128xf32>
    %143 = vector.shape_cast %135 : vector<2x4x128xf32> to vector<1x2x4x128xf32>
    tpu.vector_store %arg5[%c0_23, %c0_24, %c0_25, %c0_26], %143 {strides = array<i32>} : memref<2x2x4x128xf32, #tpu.memory_space<vmem>>, vector<1x2x4x128xf32>,
    %c1 = arith.constant 1 : index
    %c0_27 = arith.constant 0 : index
    %c0_28 = arith.constant 0 : index
    %c0_29 = arith.constant 0 : index
    %144 = vector.load %arg5[%c1, %c0_27, %c0_28, %c0_29] : memref<2x2x4x128xf32, #tpu.memory_space<vmem>>, vector<1x2x4x128xf32>
    %145 = vector.shape_cast %144 : vector<1x2x4x128xf32> to vector<2x4x128xf32>
    %146 = vector.shape_cast %140 : vector<2x4x128xf32> to vector<1x2x4x128xf32>
    tpu.vector_store %arg5[%c1, %c0_27, %c0_28, %c0_29], %146 {strides = array<i32>} : memref<2x2x4x128xf32, #tpu.memory_space<vmem>>, vector<1x2x4x128xf32>,
    return
  }
  func.func @transform_0(%arg0: i32, %arg1: i32, %arg2: i32) -> (i32, i32, i32, i32) {
    %c0_i32 = arith.constant 0 : i32
    %c0_i32_0 = arith.constant 0 : i32
    %c0_i32_1 = arith.constant 0 : i32
    return %c0_i32, %c0_i32_0, %arg2, %arg0 : i32, i32, i32, i32
  }
  func.func @transform_1(%arg0: i32, %arg1: i32, %arg2: i32) -> (i32, i32, i32, i32) {
    %c0_i32 = arith.constant 0 : i32
    %c0_i32_0 = arith.constant 0 : i32
    %c0_i32_1 = arith.constant 0 : i32
    return %c0_i32, %c0_i32_0, %arg1, %arg0 : i32, i32, i32, i32
  }
  func.func @transform_2(%arg0: i32, %arg1: i32, %arg2: i32) -> (i32, i32, i32, i32) {
    %c0_i32 = arith.constant 0 : i32
    %c0_i32_0 = arith.constant 0 : i32
    return %c0_i32, %arg2, %arg1, %arg0 : i32, i32, i32, i32
  }
}

</mosaic_0001>

<bundles_post_ra>
// kernel: custom-call
= control target key start
LH: loop header
LB: loop body
LE: loop exit
PB: predicated region body
PF: predicated region fallthrough
CT: control target
= control target key end

     0   :  { %2 = vsyncpa [#allocation0], 0  ;;  %s55_s0 = inlined_call_operand.hbm [shape: c64[4,4,4,4], index: 0, kind: input, shape index: {}]   ;;  %s56_s1 = inlined_call_operand.vmem [shape: f32[4,4,4,4], index: 1, kind: output, shape index: {}]  }
   0x1   :  { %s4_s8 = sshll.u32 %s55_s0, 4  ;;  %s6_s11 = sshll.u32 %s56_s1, 4  ;;  %s5_s8 = int_to_ptr.hbm [resolvable:$true] %s4_s8  ;;  %s7_s11 = int_to_ptr.vmem [resolvable:$true] %s6_s11 }
   0x2   :  { %9 = dma.hbm_to_vmem [thread:$0]  %s5_s8, 1024, %s7_s11, [#allocation0] }
   0x3   :  { %37 = dma.done.wait [#allocation0], 1024  }
   0x4   :  { %38 = vsyncadd [#allocation0], 4294966272 }
   0x5   :  { %12 = vsyncpa [#allocation0], 1 }

// kernel: custom-call.1
= control target key start
LH: loop header
LB: loop body
LE: loop exit
PB: predicated region body
PF: predicated region fallthrough
CT: control target
= control target key end

     0   :  { %s56_s0 = inlined_call_operand.hbm [shape: c64[4,4,4,4], index: 0, kind: input, shape index: {}]   ;;  %s57_s1 = inlined_call_operand.vmem [shape: f32[4,4,4,4], index: 1, kind: output, shape index: {}]  }
   0x1   :  { %s2_s8 = scalar_lea.hbm %s56_s0, 64 }
   0x2   :  { %3 = vsyncpa [#allocation0], 0  ;;  %s5_s9 = sshll.u32 %s2_s8, 4  ;;  %s7_s12 = sshll.u32 %s57_s1, 4  ;;  %s6_s9 = int_to_ptr.hbm [resolvable:$true] %s5_s9  ;;  %s8_s12 = int_to_ptr.vmem [resolvable:$true] %s7_s12 }
   0x3   :  { %10 = dma.hbm_to_vmem [thread:$0]  %s6_s9, 1024, %s8_s12, [#allocation0] }
   0x4   :  { %38 = dma.done.wait [#allocation0], 1024  }
   0x5   :  { %39 = vsyncadd [#allocation0], 4294966272 }
   0x6   :  { %13 = vsyncpa [#allocation0], 1 }

// kernel: reverse.0
= control target key start
LH: loop header
LB: loop body
LE: loop exit
PB: predicated region body
PF: predicated region fallthrough
CT: control target
= control target key end

     0   :  { %v72_v3 = vlaneseq  ;;  %v65_v6 = vld [vmem:[#allocation0 + $0x7] ss:$-1 sm:$0xff]  ;;  %v79_v8 = vld [vmem:[#allocation0 + $0x17] ss:$-1 sm:$0xff]  ;;  %s331_s0 = inlined_call_operand.vmem [shape: f32[2,4,16,7], index: 0, kind: input, shape index: {}]   ;;  %s332_s1 = inlined_call_operand.vmem [shape: f32[2,4,16,7], index: 1, kind: output, shape index: {}]  }
   0x1   :  { %v45_v0 = vld [vmem:[%s331_s0] sm:$0xff]  ;;  %v47_v1 = vld [vmem:[%s331_s0 + $0x8] sm:$0xff]  ;;  %v49_v2 = vld [vmem:[%s331_s0 + $0x10] sm:$0xff]  ;;  %v66_v12 = vrot.slane %v65_v6, 1  ;;  %v80_v13 = vrot.slane %v79_v8, 1 }
   0x2   :  { %46 = vst [vmem:[#allocation0 + $0x8] sm:$0xff] %v45_v0  ;;  %v51_v4 = vld [vmem:[%s331_s0 + $0x18] sm:$0xff]  ;;  %v53_v5 = vld [vmem:[%s331_s0 + $0x20] sm:$0xff]  ;;  %v55_v7 = vld [vmem:[%s331_s0 + $0x28] sm:$0xff]  ;;  %v73_v10 = vshrl.u32 %v72_v3, 7 }
   0x3   :  { %48 = vst [vmem:[#allocation0 + $0x18] sm:$0xff] %v47_v1  ;;  %v57_v9 = vld [vmem:[%s331_s0 + $0x30] sm:$0xff]  ;;  %v59_v11 = vld [vmem:[%s331_s0 + $0x38] sm:$0xff]  ;;  %v93_v14 = vld [vmem:[#allocation0 + $0x27] ss:$-1 sm:$0xff] }
   0x4   :  { %50 = vst [vmem:[#allocation0 + $0x28] sm:$0xff] %v49_v2  ;;  %vm74_vm0 = vcmp.lt.s32.totalorder %v73_v10, 7  ;;  %v107_v16 = vld [vmem:[#allocation0 + $0x37] ss:$-1 sm:$0xff]  ;;  %v94_v19 = vrot.slane %v93_v14, 1 }
   0x5   :  { %52 = vst [vmem:[#allocation0 + $0x38] sm:$0xff] %v51_v4  ;;  %v121_v22 = vld [vmem:[#allocation0 + $0x47] ss:$-1 sm:$0xff]  ;;  %v108_v24 = vrot.slane %v107_v16, 1  ;;  %v135_v28 = vld [vmem:[#allocation0 + $0x57] ss:$-1 sm:$0xff] }
   0x6   :  { %54 = vst [vmem:[#allocation0 + $0x48] sm:$0xff] %v53_v5  ;;  %v122_v29 = vrot.slane %v121_v22, 1  ;;  %v149_v32 = vld [vmem:[#allocation0 + $0x67] ss:$-1 sm:$0xff]  ;;  %v136_v33 = vrot.slane %v135_v28, 1 }
   0x7   :  { %56 = vst [vmem:[#allocation0 + $0x58] sm:$0xff] %v55_v7  ;;  %v163_v36 = vld [vmem:[#allocation0 + $0x77] ss:$-1 sm:$0xff]  ;;  %v150_v37 = vrot.slane %v149_v32, 1 }
   0x8   :  { %58 = vst [vmem:[#allocation0 + $0x68] sm:$0xff] %v57_v9  ;;  %v164_v40 = vrot.slane %v163_v36, 1 }
   0x9   :  { %60 = vst [vmem:[#allocation0 + $0x78] sm:$0xff] %v59_v11  ;;  %v70_v15 = vld [vmem:[#allocation0 + $0xf] ss:$-1 sm:$0xff] }
   0xa   :  { %67 = vst [vmem:[#allocation1] sm:$0xff] %v66_v12  ;;  %v71_v17 = vrot.slane %v70_v15, 1  ;;  %v84_v18 = vld [vmem:[#allocation0 + $0x1f] ss:$-1 sm:$0xff] }
   0xb   :  { %81 = vst [vmem:[#allocation1 + $0x8] sm:$0xff] %v80_v13  ;;  %v85_v20 = vrot.slane %v84_v18, 1  ;;  %v98_v21 = vld [vmem:[#allocation0 + $0x2f] ss:$-1 sm:$0xff] }
   0xc   :  { %75 = vst.msk [vmem:[#allocation1] sm:$0xff] %vm74_vm0, %v71_v17  ;;  %v99_v23 = vrot.slane %v98_v21, 1  ;;  %v112_v25 = vld [vmem:[#allocation0 + $0x3f] ss:$-1 sm:$0xff] }
   0xd   :  { %89 = vst.msk [vmem:[#allocation1 + $0x8] sm:$0xff] %vm74_vm0, %v85_v20  ;;  %v113_v26 = vrot.slane %v112_v25, 1  ;;  %v126_v27 = vld [vmem:[#allocation0 + $0x4f] ss:$-1 sm:$0xff] }
   0xe   :  { %95 = vst [vmem:[#allocation1 + $0x10] sm:$0xff] %v94_v19  ;;  %v140_v30 = vld [vmem:[#allocation0 + $0x5f] ss:$-1 sm:$0xff]  ;;  %v127_v31 = vrot.slane %v126_v27, 1 }
   0xf   :  { %103 = vst.msk [vmem:[#allocation1 + $0x10] sm:$0xff] %vm74_vm0, %v99_v23  ;;  %v154_v34 = vld [vmem:[#allocation0 + $0x6f] ss:$-1 sm:$0xff]  ;;  %v141_v35 = vrot.slane %v140_v30, 1 }
  0x10   :  { %109 = vst [vmem:[#allocation1 + $0x18] sm:$0xff] %v108_v24  ;;  %v168_v38 = vld [vmem:[#allocation0 + $0x7f] ss:$-1 sm:$0xff]  ;;  %v155_v39 = vrot.slane %v154_v34, 1 }
  0x11   :  { %117 = vst.msk [vmem:[#allocation1 + $0x18] sm:$0xff] %vm74_vm0, %v113_v26  ;;  %v169_v41 = vrot.slane %v168_v38, 1 }
  0x12   :  { %123 = vst [vmem:[#allocation1 + $0x20] sm:$0xff] %v122_v29 }
  0x13   :  { %131 = vst.msk [vmem:[#allocation1 + $0x20] sm:$0xff] %vm74_vm0, %v127_v31  ;;  %v216_v42 = vld [vmem:[#allocation1] sm:$0xff] }
  0x14   :  { %137 = vst [vmem:[#allocation1 + $0x28] sm:$0xff] %v136_v33  ;;  %v218_v43 = vld [vmem:[#allocation1 + $0x8] sm:$0xff] }
  0x15   :  { %145 = vst.msk [vmem:[#allocation1 + $0x28] sm:$0xff] %vm74_vm0, %v141_v35 }
  0x16   :  { %151 = vst [vmem:[#allocation1 + $0x30] sm:$0xff] %v150_v37  ;;  %v220_v44 = vld [vmem:[#allocation1 + $0x10] sm:$0xff] }
  0x17   :  { %159 = vst.msk [vmem:[#allocation1 + $0x30] sm:$0xff] %vm74_vm0, %v155_v39 }
  0x18   :  { %165 = vst [vmem:[#allocation1 + $0x38] sm:$0xff] %v164_v40  ;;  %v222_v45 = vld [vmem:[#allocation1 + $0x18] sm:$0xff] }
  0x19   :  { %173 = vst.msk [vmem:[#allocation1 + $0x38] sm:$0xff] %vm74_vm0, %v169_v41 }
  0x1a   :  { %217 = vst [vmem:[%s332_s1] sm:$0xff] %v216_v42  ;;  %v224_v46 = vld [vmem:[#allocation1 + $0x20] sm:$0xff] }
  0x1b   :  { %219 = vst [vmem:[%s332_s1 + $0x8] sm:$0xff] %v218_v43 }
  0x1c   :  { %221 = vst [vmem:[%s332_s1 + $0x10] sm:$0xff] %v220_v44  ;;  %v226_v47 = vld [vmem:[#allocation1 + $0x28] sm:$0xff] }
  0x1d   :  { %223 = vst [vmem:[%s332_s1 + $0x18] sm:$0xff] %v222_v45 }
  0x1e   :  { %225 = vst [vmem:[%s332_s1 + $0x20] sm:$0xff] %v224_v46  ;;  %v228_v48 = vld [vmem:[#allocation1 + $0x30] sm:$0xff] }
  0x1f   :  { %227 = vst [vmem:[%s332_s1 + $0x28] sm:$0xff] %v226_v47 }
  0x20   :  { %229 = vst [vmem:[%s332_s1 + $0x30] sm:$0xff] %v228_v48  ;;  %v230_v49 = vld [vmem:[#allocation1 + $0x38] sm:$0xff] }
  0x21   :  { %231 = vst [vmem:[%s332_s1 + $0x38] sm:$0xff] %v230_v49 }

// kernel: spectral_conv2d.1
= control target key start
LH: loop header
LB: loop body
LE: loop exit
PB: predicated region body
PF: predicated region fallthrough
CT: control target
= control target key end

     0   :  { %s330_s0 = inlined_call_operand.vmem [shape: f32[4,2,2,128], index: 0, kind: input, shape index: {}]   ;;  %s331_s1 = inlined_call_operand.vmem [shape: f32[4,3,4,128], index: 1, kind: input, shape index: {}]   ;;  %s332_s2 = inlined_call_operand.vmem [shape: f32[2,2,4,128], index: 2, kind: output, shape index: {}]  }
   0x1   :  { %v225_v0 = vld [vmem:[%s330_s0] sm:$0x3]  ;;  %v12_v1 = vld [vmem:[%s330_s0 + $0x2] sm:$0x3]  ;;  %v15_v3 = vld [vmem:[%s331_s1 + $0x8] sm:$0xf] }
   0x2   :  { %v13_v2 = vld [vmem:[%s331_s1] sm:$0xf]  ;;  %v22_v4 = vadd.f32 %v12_v1, %v225_v0  ;;  %v32_v5 = vperm.slane %v12_v1, 0  ;;  %v240_v6 = vld [vmem:[%s330_s0 + $0x4] sm:$0x3]  ;;  %v17_v7 = vrot.slane %v225_v0, 1 }
   0x3   :  { %v191_v8 = vld [vmem:[%s330_s0 + $0x6] sm:$0x3]  ;;  %v192_v9 = vld [vmem:[%s331_s1 + $0xc] sm:$0xf]  ;;  %v194_v10 = vld [vmem:[%s331_s1 + $0x14] sm:$0xf] }
   0x4   :  { %v26_v11 = vperm.slane %v22_v4, 0  ;;  %v36_v12 = vmul.f32 %v32_v5, %v15_v3  ;;  %v65_v13 = vadd.f32 %v191_v8, %v240_v6  ;;  %v75_v14 = vperm.slane %v191_v8, 0  ;;  %v256_v15 = vld [vmem:[%s330_s0 + $0x8] sm:$0x3]  ;;  %v196_v16 = vld [vmem:[%s330_s0 + $0xa] sm:$0x3] }
   0x5   :  { %v264_v17 = vld [vmem:[%s331_s1 + $0x18] sm:$0xf]  ;;  %v199_v18 = vld [vmem:[%s331_s1 + $0x20] sm:$0xf]  ;;  %v108_v19 = vadd.f32 %v196_v16, %v256_v15  ;;  %v118_v20 = vperm.slane %v196_v16, 0  ;;  %v20_v21 = vrot.slane %v12_v1, 1 }
   0x6   :  { %v270_v22 = vmul.f32 %v26_v11, %v13_v2  ;;  %v69_v23 = vperm.slane %v65_v13, 0  ;;  %v79_v24 = vmul.f32 %v194_v10, %v75_v14  ;;  %v275_v25 = vld [vmem:[%s330_s0 + $0xc] sm:$0x3]  ;;  %v201_v26 = vld [vmem:[%s330_s0 + $0xe] sm:$0x3]  ;;  %v60_v27 = vrot.slane %v240_v6, 1 }
   0x7   :  { %v112_v28 = vperm.slane %v108_v19, 0  ;;  %v122_v29 = vmul.f32 %v199_v18, %v118_v20  ;;  %v204_v30 = vld [vmem:[%s331_s1 + $0x2c] sm:$0xf]  ;;  %v151_v31 = vadd.f32 %v201_v26, %v275_v25  ;;  %v161_v32 = vperm.slane %v201_v26, 0  ;;  %v202_v35 = vld [vmem:[%s331_s1 + $0x24] sm:$0xf] }
   0x8   :  { %v38_v33 = vsub.f32 %v270_v22, %v36_v12  ;;  %v73_v34 = vmul.f32 %v192_v9, %v69_v23  ;;  %v23_v36 = vadd.f32 %v20_v21, %v17_v7  ;;  %v33_v37 = vperm.slane %v20_v21, 0  ;;  %v14_v62 = vld [vmem:[%s331_s1 + $0x4] sm:$0xf]  ;;  %v193_v4 = vld [vmem:[%s331_s1 + $0x10] sm:$0xf] }
   0x9   :  { %v116_v38 = vmul.f32 %v264_v17, %v112_v28  ;;  %v155_v39 = vperm.slane %v151_v31, 0  ;;  %v165_v40 = vmul.f32 %v204_v30, %v161_v32  ;;  %v63_v41 = vrot.slane %v191_v8, 1  ;;  %v203_v19 = vld [vmem:[%s331_s1 + $0x28] sm:$0xf] }
   0xa   :  { %v81_v42 = vsub.f32 %v73_v34, %v79_v24  ;;  %v27_v43 = vperm.slane %v23_v36, 0  ;;  %v37_v44 = vmul.f32 %v33_v37, %v15_v3  ;;  %v103_v45 = vrot.slane %v256_v15, 1 }
   0xb   :  { %v124_v46 = vsub.f32 %v116_v38, %v122_v29  ;;  %v159_v47 = vmul.f32 %v202_v35, %v155_v39  ;;  %v66_v48 = vadd.f32 %v63_v41, %v60_v27  ;;  %v76_v49 = vperm.slane %v63_v41, 0 }
   0xc   :  { %v83_v50 = vadd.f32 %v81_v42, %v38_v33  ;;  %v31_v51 = vmul.f32 %v27_v43, %v13_v2  ;;  %v106_v52 = vrot.slane %v196_v16, 1  ;;  %v146_v53 = vrot.slane %v275_v25, 1 }
   0xd   :  { %v167_v54 = vsub.f32 %v159_v47, %v165_v40  ;;  %v70_v55 = vperm.slane %v66_v48, 0  ;;  %v80_v56 = vmul.f32 %v194_v10, %v76_v49  ;;  %v149_v57 = vrot.slane %v201_v26, 1 }
   0xe   :  { %v126_v58 = vadd.f32 %v124_v46, %v83_v50  ;;  %v39_v59 = vsub.f32 %v31_v51, %v37_v44  ;;  %v109_v60 = vadd.f32 %v106_v52, %v103_v45  ;;  %v119_v61 = vperm.slane %v106_v52, 0 }
   0xf   :  { %v74_v63 = vmul.f32 %v192_v9, %v70_v55  ;;  %v152_v1 = vadd.f32 %v149_v57, %v146_v53  ;;  %v162_v3 = vperm.slane %v149_v57, 0  ;;  %v42_v2 = vperm.slane %v225_v0, 0  ;;  %v198_v9 = vld [vmem:[%s331_s1 + $0x1c] sm:$0xf] }
  0x10   :  { %v169_v5 = vadd.f32 %v167_v54, %v126_v58  ;;  %v113_v8 = vperm.slane %v109_v60, 0  ;;  %v123_v10 = vmul.f32 %v199_v18, %v119_v61  ;;  %v85_v11 = vperm.slane %v240_v6, 0 }
  0x11   :  { %v82_v12 = vsub.f32 %v74_v63, %v80_v56  ;;  %v156_v13 = vperm.slane %v152_v1, 0  ;;  %v166_v14 = vmul.f32 %v204_v30, %v162_v3  ;;  %v46_v16 = vmul.f32 %v42_v2, %v14_v62 }
  0x12   :  { %181 = vst [vmem:[%s332_s2] sm:$0xf] %v169_v5  ;;  %v117_v18 = vmul.f32 %v264_v17, %v113_v8  ;;  %v89_v20 = vmul.f32 %v193_v4, %v85_v11  ;;  %v128_v21 = vperm.slane %v256_v15, 0  ;;  %v171_v23 = vperm.slane %v275_v25, 0 }
  0x13   :  { %v84_v24 = vadd.f32 %v82_v12, %v39_v59  ;;  %v160_v26 = vmul.f32 %v202_v35, %v156_v13  ;;  %v48_v28 = vadd.f32 %v46_v16, %v270_v22  ;;  %v43_v29 = vperm.slane %v17_v7, 0 }
  0x14   :  { %v125_v30 = vsub.f32 %v117_v18, %v123_v10  ;;  %v91_v31 = vadd.f32 %v89_v20, %v73_v34  ;;  %v132_v32 = vmul.f32 %v198_v9, %v128_v21  ;;  %v175_v33 = vmul.f32 %v203_v19, %v171_v23 }
  0x15   :  { %v168_v36 = vsub.f32 %v160_v26, %v166_v14  ;;  %v47_v37 = vmul.f32 %v43_v29, %v14_v62  ;;  %v86_v17 = vperm.slane %v60_v27, 0  ;;  %v129_v39 = vperm.slane %v103_v45, 0 }
  0x16   :  { %v127_v15 = vadd.f32 %v125_v30, %v84_v24  ;;  %v93_v40 = vadd.f32 %v91_v31, %v48_v28  ;;  %v134_v25 = vadd.f32 %v132_v32, %v116_v38  ;;  %v177_v41 = vadd.f32 %v175_v33, %v159_v47 }
  0x17   :  { %v49_v35 = vadd.f32 %v47_v37, %v31_v51  ;;  %v90_v42 = vmul.f32 %v193_v4, %v86_v17  ;;  %v133_v22 = vmul.f32 %v198_v9, %v129_v39  ;;  %v172_v43 = vperm.slane %v146_v53, 0 }
  0x18   :  { %v170_v0 = vadd.f32 %v168_v36, %v127_v15  ;;  %v136_v7 = vadd.f32 %v134_v25, %v93_v40 }
  0x19   :  { %v92_v44 = vadd.f32 %v90_v42, %v74_v63  ;;  %v135_v34 = vadd.f32 %v133_v22, %v117_v18  ;;  %v176_v46 = vmul.f32 %v203_v19, %v172_v43 }
  0x1a   :  { %182 = vst [vmem:[%s332_s2 + $0x4] sm:$0xf] %v170_v0  ;;  %v179_v6 = vadd.f32 %v177_v41, %v136_v7 }
  0x1b   :  { %v94_v27 = vadd.f32 %v92_v44, %v49_v35  ;;  %v178_v45 = vadd.f32 %v176_v46, %v160_v26 }
  0x1c   :  { %205 = vst [vmem:[%s332_s2 + $0x8] sm:$0xf] %v179_v6 }
  0x1d   :  { %v137_v38 = vadd.f32 %v135_v34, %v94_v27 }
  0x1f   :  { %v180_v47 = vadd.f32 %v178_v45, %v137_v38 }
  0x21   :  { %206 = vst [vmem:[%s332_s2 + $0xc] sm:$0xf] %v180_v47 }

</bundles_post_ra>
